<compile_context>
chip_gen: v7x
topology: tpu7x:2x2x1
jax: 0.10.0
libtpu: 0.0.40
codegen_flags: <defaults>
</compile_context>

<pallas_src>
import jax
import jax.numpy as jnp
from jax.experimental import pallas as pl
from jax.experimental.pallas import tpu as pltpu


def _identity_kernel(h_ref, o_ref):
    # Pass-through of the current (TS, H) row tile.
    o_ref[...] = h_ref[...]


def _row_tile(rows: int, hidden: int, dtype) -> int:
    """Pick a row-tile size: big enough to amortize per-grid-step overhead,
    small enough that (in + out) x double-buffer fits comfortably in VMEM on
    every TPU generation (v7x has only 64 MiB physical / 32 MiB scoped)."""
    itemsize = jnp.dtype(dtype).itemsize
    sublane = max(8, 32 // itemsize)            # 8 (f32) / 16 (bf16) / 32 (i8)
    vmem_budget = 24 * 1024 * 1024              # conservative across v5e/v6e/v7x
    max_rows_by_vmem = max(sublane, vmem_budget // (4 * hidden * itemsize))
    ts = min(1024, max_rows_by_vmem)            # ~512-1024 rows ~ 85%+ of HBM roofline
    ts = max(sublane, (ts // sublane) * sublane)
    if rows <= ts:
        return rows                             # full extent: always a legal block
    return ts


def mbart_identity_decoder(hidden_states,
                           attention_mask=None,
                           encoder_hidden_states=None,
                           encoder_attention_mask=None,
                           layer_head_mask=None,
                           cross_attn_layer_head_mask=None,
                           past_key_value=None,
                           output_attentions=None,
                           use_cache=None):
    """Pallas equivalent of mBARTIdentityDecoder.forward: returns [hidden_states].

    All auxiliary arguments are accepted and ignored, exactly like the
    reference module.
    """
    B, S, H = hidden_states.shape
    rows = B * S
    x2d = hidden_states.reshape(rows, H)        # free row-major reshape

    ts = _row_tile(rows, H, hidden_states.dtype)
    grid = (pl.cdiv(rows, ts),)

    out2d = pl.pallas_call(
        _identity_kernel,
        out_shape=jax.ShapeDtypeStruct((rows, H), hidden_states.dtype),
        grid=grid,
        in_specs=[pl.BlockSpec((ts, H), lambda i: (i, 0))],
        out_specs=pl.BlockSpec((ts, H), lambda i: (i, 0)),
        input_output_aliases={0: 0},            # output reuses the input buffer
        compiler_params=pltpu.CompilerParams(
            dimension_semantics=("parallel",),  # lets v7x's 2 TCs split the stream
            vmem_limit_bytes=32 * 1024 * 1024,
        ),
    )(x2d)

    out = out2d.reshape(B, S, H)
    return [out]


if __name__ == "__main__":
    key = jax.random.PRNGKey(0)
    batch, seq, hidden = 2, 8, 32
    hidden_states = jax.random.normal(key, (batch, seq, hidden), dtype=jnp.float32)

    result = mbart_identity_decoder(hidden_states)
    out = jax.block_until_ready(result[0])

    assert isinstance(result, list) and len(result) == 1
    assert out.shape == hidden_states.shape and out.dtype == hidden_states.dtype
    assert bool(jnp.all(out == hidden_states))
    print("KERNEL_OK")
</pallas_src>

<mosaic_0001>
module attributes {stable_mosaic.version = 11 : i64} {
  func.func @_identity_kernel(%arg0: i32, %arg1: memref<16x32xf32, #tpu.memory_space<vmem>>, %arg2: memref<16x32xf32, #tpu.memory_space<vmem>>) attributes {dimension_semantics = [#tpu.dimension_semantics<parallel>], iteration_bounds = array<i64: 1>, scalar_prefetch = 0 : i64, scratch_operands = 0 : i64, tpu.core_type = #tpu.core_type<tc>, window_params = [{transform_indices = @transform_0, window_bounds = array<i64: 16, 32>}, {transform_indices = @transform_1, window_bounds = array<i64: 16, 32>}]} {
    %c0 = arith.constant 0 : index
    %c0_0 = arith.constant 0 : index
    %0 = vector.load %arg1[%c0, %c0_0] : memref<16x32xf32, #tpu.memory_space<vmem>>, vector<16x32xf32>
    %c0_1 = arith.constant 0 : index
    %c0_2 = arith.constant 0 : index
    %1 = vector.load %arg2[%c0_1, %c0_2] : memref<16x32xf32, #tpu.memory_space<vmem>>, vector<16x32xf32>
    tpu.vector_store %arg2[%c0_1, %c0_2], %0 {strides = array<i32>} : memref<16x32xf32, #tpu.memory_space<vmem>>, vector<16x32xf32>,
    return
  }
  func.func @transform_0(%arg0: i32) -> (i32, i32) {
    %c0_i32 = arith.constant 0 : i32
    %c0_i32_0 = arith.constant 0 : i32
    return %arg0, %c0_i32 : i32, i32
  }
  func.func @transform_1(%arg0: i32) -> (i32, i32) {
    %c0_i32 = arith.constant 0 : i32
    %c0_i32_0 = arith.constant 0 : i32
    return %arg0, %c0_i32 : i32, i32
  }
}

</mosaic_0001>

<bundles_post_ra>
// kernel: tpu_custom_call.1
= control target key start
LH: loop header
LB: loop body
LE: loop exit
PB: predicated region body
PF: predicated region fallthrough
CT: control target
= control target key end

     0   :  { %6 = vsyncpa [#allocation3], 0  ;;  %s135_s0 = inlined_call_operand.hbm [shape: f32[16,32], index: 0, kind: input, shape index: {}, may-alias: {0,1}]   ;;  %s136_s1 = inlined_call_operand.hbm [shape: f32[16,32], index: 1, kind: output, shape index: {}, may-alias: {0,1}]  }
   0x1   :  { %7 = vsyncpa [#allocation4], 0  ;;  %s97_s6 = smov [#allocation2]   ;;  %s49_s10 = scalar_lea.hbm %s135_s0, 256 }
   0x2   :  { %s13_s7 = sshll.u32 %s97_s6, 4  ;;  %p50_p0 = scmp.ne.s32.totalorder %s135_s0, %s49_s10  ;;  %s14_s7 = int_to_ptr.vmem [resolvable:$true] %s13_s7 }
   0x3   :  { %p53_p1 = scmp.lt.u32.totalorder %s49_s10, %s135_s0 }
   0x5   :  { %p55_p2 = pnand %p53_p1, %p50_p0 }
   0x7   :  { %58 = shalt.err (!%p55_p2)
}
   0x8   :  { %s59_s15 = scalar_lea.vmem %s14_s7, 256  ;;  %p64_p4 = scmp.lt.s32.totalorder %s14_s7, %s14_s7 }
   0x9   :  { %p60_p3 = scmp.ne.s32.totalorder %s14_s7, %s59_s15  ;;  %p65_p5 = scmp.lt.s32.totalorder %s59_s15, %s59_s15 }
   0xb   :  { %p66_p6 = por %p65_p5, %p64_p4 }
   0xd   :  { %p67_p7 = pnand %p66_p6, %p60_p3 }
   0xf   :  { %70 = shalt.err (!%p67_p7)
}
  0x10   :  { %s98_s16 = smov 128   ;;  %s99_s17 = smov 8  }
  0x11   :  { %19 = dma.hbm_to_vmem [thread:$0]  %s135_s0, 256, %s14_s7, [#allocation3], %s98_s16, %s98_s16, %s99_s17  }
  0x12   :  { %93 = dma.done.wait [#allocation3], 256  }
  0x13   :  { %94 = vsyncadd [#allocation3], 4294967040  ;;  %s100_s20 = smov [#allocation5]   ;;  %vm25_vm0 = vcmask 261120   ;;  %v23_v0 = vld [vmem:[#allocation2] sm:$0xff]  ;;  %v24_v1 = vld [vmem:[#allocation2 + $0x8] sm:$0xff] }
  0x14   :  { %s33_s21 = sshll.u32 %s100_s20, 4  ;;  %26 = vst.msk [vmem:[#allocation5] sm:$0xff] %vm25_vm0, %v23_v0  ;;  %27 = vst.msk [vmem:[#allocation5 + $0x8] sm:$0xff] %vm25_vm0, %v24_v1  ;;  %s34_s21 = int_to_ptr.vmem [resolvable:$true] %s33_s21 }
  0x15   :  { %s71_s22 = scalar_lea.vmem %s34_s21, 256  ;;  %p76_p9 = scmp.lt.s32.totalorder %s34_s21, %s34_s21 }
  0x16   :  { %p72_p8 = scmp.ne.s32.totalorder %s34_s21, %s71_s22  ;;  %p77_p10 = scmp.lt.s32.totalorder %s71_s22, %s71_s22 }
  0x18   :  { %p78_p11 = por %p77_p10, %p76_p9 }
  0x1a   :  { %p79_p12 = pnand %p78_p11, %p72_p8 }
  0x1c   :  { %82 = shalt.err (!%p79_p12)
}
  0x1d   :  { %s83_s0 = scalar_lea.hbm %s136_s1, 256 }
  0x1e   :  { %p84_p13 = scmp.ne.s32.totalorder %s136_s1, %s83_s0  ;;  %p87_p0 = scmp.lt.u32.totalorder %s83_s0, %s136_s1 }
  0x20   :  { %p89_p1 = pnand %p87_p0, %p84_p13 }
  0x22   :  { %92 = shalt.err (!%p89_p1)
}
  0x23   :  { %39 = dma.vmem_to_hbm [thread:$0]  %s34_s21, 256, %s136_s1, [#allocation4], %s98_s16, %s98_s16, %s99_s17  }
  0x24   :  { %95 = dma.done.wait [#allocation4], 256  }
  0x25   :  { %96 = vsyncadd [#allocation4], 4294967040 }
  0x26   :  { %43 = vsyncpa [#allocation3], 1 }
  0x27   :  { %44 = vsyncpa [#allocation4], 1 }

</bundles_post_ra>
